<compile_context>
chip_gen: v6e
topology: v6e:2x2x1
jax: 0.10.0
libtpu: 0.0.40
codegen_flags: <defaults>
</compile_context>

<pallas_src>
import jax
import jax.numpy as jnp
from jax.experimental import pallas as pl
from jax.experimental.pallas import tpu as pltpu  # noqa: F401  (TPU backend)


def mycell_kernel(x_ref, wt_ref, b_ref, h_ref, o_ref):
    # Cast once on load; all arithmetic (incl. the gate reduction) in f32.
    x = x_ref[...].astype(jnp.float32)    # (B, F_in)
    wt = wt_ref[...].astype(jnp.float32)  # (F_in, F_out)  pre-transposed weight
    b = b_ref[...].astype(jnp.float32)    # (1, F_out)
    h = h_ref[...].astype(jnp.float32)    # (B, F_out)

    # Linear: y = x @ W.T + b   (W already transposed in the wrapper)
    y = jnp.dot(x, wt, preferred_element_type=jnp.float32) + b

    # Decision gate: global sum over the whole (unpadded) tensor.
    s = jnp.sum(y)
    y = jnp.where(s > 0.0, y, -y)

    # new_h = tanh(dg(linear(x)) + h)   -- tanh on the EUP.
    o_ref[...] = jnp.tanh(y + h).astype(o_ref.dtype)


def my_cell(x, h, w, b):
    """x: (B, 4), h: (B, 4), w: (4, 4) [torch layout], b: (4,) -> (new_h, new_h)."""
    B, F_in = x.shape
    F_out = w.shape[0]

    wt = w.T                      # (F_in, F_out): tiny transpose, no pad HLOs
    b2 = b.reshape(1, F_out)      # (1, F_out)

    out = pl.pallas_call(
        mycell_kernel,
        out_shape=jax.ShapeDtypeStruct((B, F_out), x.dtype),
        in_specs=[
            pl.BlockSpec((B, F_in), lambda: (0, 0)),
            pl.BlockSpec((F_in, F_out), lambda: (0, 0)),
            pl.BlockSpec((1, F_out), lambda: (0, 0)),
            pl.BlockSpec((B, F_out), lambda: (0, 0)),
        ],
        out_specs=pl.BlockSpec((B, F_out), lambda: (0, 0)),
        # Hidden state aliases the output buffer (same shape/dtype; h is in
        # VMEM before the output writeback, so no hazard).
        input_output_aliases={3: 0},
    )(x, wt, b2, h)

    return out, out


def reference(x, h, w, b):
    y = x @ w.T + b
    y = jnp.where(jnp.sum(y) > 0, y, -y)
    nh = jnp.tanh(y + h)
    return nh, nh


if __name__ == "__main__":
    key = jax.random.PRNGKey(0)
    kx, kh, kw, kb = jax.random.split(key, 4)

    B, F = 2, 4
    x = jax.random.normal(kx, (B, F), dtype=jnp.float32)
    h = jax.random.normal(kh, (B, F), dtype=jnp.float32)
    # Deterministic parameters (same shapes as torch.nn.Linear(4, 4)).
    w = jax.random.uniform(kw, (F, F), dtype=jnp.float32, minval=-0.5, maxval=0.5)
    b = jax.random.uniform(kb, (F,), dtype=jnp.float32, minval=-0.5, maxval=0.5)

    # Reference computed first (h is aliased/donated inside the pallas_call;
    # the caller-side array stays valid, but ordering keeps things tidy).
    ref_h, _ = reference(x, h, w, b)

    new_h, new_h2 = my_cell(x, h, w, b)
    jax.block_until_ready(new_h)

    assert new_h.shape == (B, F)
    assert jnp.allclose(new_h, ref_h, atol=1e-5, rtol=1e-5), "mismatch vs reference"
    assert bool(jnp.all(new_h2 == new_h))

    print("KERNEL_OK")
</pallas_src>

<mosaic_0001>
module attributes {stable_mosaic.version = 11 : i64} {
  func.func @mycell_kernel(%arg0: memref<2x4xf32, #tpu.memory_space<vmem>>, %arg1: memref<4x4xf32, #tpu.memory_space<vmem>>, %arg2: memref<1x4xf32, #tpu.memory_space<vmem>>, %arg3: memref<2x4xf32, #tpu.memory_space<vmem>>, %arg4: memref<2x4xf32, #tpu.memory_space<vmem>>) attributes {dimension_semantics = [], scalar_prefetch = 0 : i64, scratch_operands = 0 : i64, tpu.core_type = #tpu.core_type<tc>} {
    %c0 = arith.constant 0 : index
    %c0_0 = arith.constant 0 : index
    %0 = vector.load %arg0[%c0, %c0_0] : memref<2x4xf32, #tpu.memory_space<vmem>>, vector<2x4xf32>
    %c0_1 = arith.constant 0 : index
    %c0_2 = arith.constant 0 : index
    %1 = vector.load %arg1[%c0_1, %c0_2] : memref<4x4xf32, #tpu.memory_space<vmem>>, vector<4x4xf32>
    %c0_3 = arith.constant 0 : index
    %c0_4 = arith.constant 0 : index
    %2 = vector.load %arg2[%c0_3, %c0_4] : memref<1x4xf32, #tpu.memory_space<vmem>>, vector<1x4xf32>
    %c0_5 = arith.constant 0 : index
    %c0_6 = arith.constant 0 : index
    %3 = vector.load %arg3[%c0_5, %c0_6] : memref<2x4xf32, #tpu.memory_space<vmem>>, vector<2x4xf32>
    %cst = arith.constant dense<0.000000e+00> : vector<2x4xf32>
    %4 = tpu.matmul %0, %1, %cst {dimension_numbers = #tpu.dot_dimension_numbers<[1], [0], [0], [1], [0, 0, 1, 1], [], []>} : vector<2x4xf32>, vector<4x4xf32>, vector<2x4xf32> -> vector<2x4xf32>
    %5 = vector.broadcast %2 : vector<1x4xf32> to vector<2x4xf32>
    %6 = arith.addf %4, %5 : vector<2x4xf32>
    %7 = vector.shape_cast %6 : vector<2x4xf32> to vector<1x2x4xf32>
    %cst_7 = arith.constant dense<0.000000e+00> : vector<1xf32>
    %8 = vector.multi_reduction <add>, %7, %cst_7 [1, 2] : vector<1x2x4xf32> to vector<1xf32>
    %9 = vector.shape_cast %8 : vector<1xf32> to vector<1x1x1xf32>
    %10 = vector.extract %9[0, 0, 0] : f32 from vector<1x1x1xf32>
    %cst_8 = arith.constant 0.000000e+00 : f32
    %11 = arith.cmpf ogt, %10, %cst_8 : f32
    %cst_9 = arith.constant 0.000000e+00 : f32
    %12 = vector.broadcast %cst_9 : f32 to vector<2x4xf32>
    %13 = arith.subf %12, %6 : vector<2x4xf32>
    %14 = arith.select %11, %6, %13 : vector<2x4xf32>
    %15 = arith.addf %14, %3 : vector<2x4xf32>
    %16 = math.tanh %15 : vector<2x4xf32>
    %c0_10 = arith.constant 0 : index
    %c0_11 = arith.constant 0 : index
    %17 = vector.load %arg4[%c0_10, %c0_11] : memref<2x4xf32, #tpu.memory_space<vmem>>, vector<2x4xf32>
    tpu.vector_store %arg4[%c0_10, %c0_11], %16 {strides = array<i32>} : memref<2x4xf32, #tpu.memory_space<vmem>>, vector<2x4xf32>,
    return
  }
}

</mosaic_0001>

<bundles_post_ra>
// kernel: tpu_custom_call.1
= control target key start
LH: loop header
LB: loop body
LE: loop exit
PB: predicated region body
PF: predicated region fallthrough
CT: control target
= control target key end

     0   :  { %9 = vsyncpa [#allocation3], 0  ;;  %s261_s0 = inlined_call_operand.vmem [shape: f32[2,4], index: 0, kind: input, shape index: {}]   ;;  %s262_s1 = inlined_call_operand.vmem [shape: f32[4,4], index: 1, kind: input, shape index: {}]   ;;  %s263_s2 = inlined_call_operand.vmem [shape: f32[1,4], index: 2, kind: input, shape index: {}]   ;;  %s264_s3 = inlined_call_operand.hbm [shape: f32[2,4], index: 3, kind: input, shape index: {}, may-alias: {3,4}]   ;;  %s265_s4 = inlined_call_operand.hbm [shape: f32[2,4], index: 4, kind: output, shape index: {}, may-alias: {3,4}]  }
   0x1   :  { %10 = vsyncpa [#allocation4], 0  ;;  %s215_s15 = smov [#allocation2]  }
   0x2   :  { %s23_s16 = sshll.u32 %s215_s15, 4  ;;  %s24_s16 = int_to_ptr.vmem [resolvable:$true] %s23_s16 }
   0x3   :  { %s179_s17 = scalar_lea.vmem %s24_s16, 32  ;;  %p184_p1 = scmp.lt.s32.totalorder %s24_s16, %s24_s16 }
   0x4   :  { %p180_p0 = scmp.ne.s32.totalorder %s24_s16, %s179_s17  ;;  %p185_p2 = scmp.lt.s32.totalorder %s179_s17, %s179_s17 }
   0x6   :  { %p186_p3 = por %p185_p2, %p184_p1 }
   0x8   :  { %p187_p4 = pnand %p186_p3, %p180_p0 }
   0xa   :  { %190 = shalt.err (!%p187_p4)
}
   0xb   :  { %26 = dma.hbm_to_vmem [thread:$0]  %s264_s3, 32, %s24_s16, [#allocation3]  }
   0xc   :  { %211 = dma.done.wait [#allocation3], 32  }
   0xd   :  { %212 = vsyncadd [#allocation3], 4294967264  ;;  %v216_v0 = vmov 0.0   ;;  %vm217_vm0 = vmmov 0   ;;  %vm44_vm1 = vcmask 1043456   ;;  %vm40_vm2 = vcmask 31744  }
   0xe   :  { %158 = vmatprep.subr.mxu0 %v216_v0  ;;  %160 = vmatprep.mubr.msk.f32.mxu0 %vm217_vm0, %v216_v0  ;;  %v31_v1 = vld [vmem:[%s262_s1] sm:$0xf]  ;;  %vm118_vm3 = vcmask 25600  }
   0xf   :  { %v30_v2 = vld [vmem:[%s261_s0] sm:$0x3]  ;;  %159 = vmatpush3.msk.msra.mxu0 %vm44_vm1, %v31_v1 }
  0x10   :  { %161 = vmatmul.mubr.msk.f32.vlgmr.msra.gmra.mxu0 %vm40_vm2, %v30_v2  ;;  %v153_v3 = vld [vmem:[%s263_s2] ss:$0 sm:$0xff]  ;;  %s218_s2 = smov [#allocation5]  }
  0x11   :  { %v33_v16 = vld [vmem:[#allocation2] sm:$0x3]  ;;  %s144_s25 = sshll.u32 %s218_s2, 4  ;;  %s145_s25 = int_to_ptr.vmem [resolvable:$true] %s144_s25 }
  0x12   :  { %s191_s26 = scalar_lea.vmem %s145_s25, 32  ;;  %p196_p7 = scmp.lt.s32.totalorder %s145_s25, %s145_s25 }
  0x13   :  { %p192_p6 = scmp.ne.s32.totalorder %s145_s25, %s191_s26  ;;  %p197_p8 = scmp.lt.s32.totalorder %s191_s26, %s191_s26 }
  0x15   :  { %p198_p9 = por %p197_p8, %p196_p7 }
  0x17   :  { %p199_p10 = pnand %p198_p9, %p192_p6 }
  0xd0   :  { %v114_v4 = vpop.f32.mrf.mxu0 }
  0xd1   :  { %v115_v5 = vadd.f32 %v153_v3, %v114_v4 }
  0xd2   :  { %v162_v6 = vpop.f32.mrf.mxu0 }
  0xd3   :  { %v119_v7 = vsel %vm118_vm3, %v115_v5, 0.0  ;;  %v130_v15 = vsub.f32 0.0, %v115_v5 }
  0xd4   :  { %120 = vadd.xlane.f32.xlu0 %v119_v7 }
 0x15d   :  { %v121_v8 = vpop.xlane.xlu0 %120 }
 0x15e   :  { %v122_v9 = vrot.slane %v121_v8, 4 }
 0x160   :  { %v123_v10 = vadd.f32 %v122_v9, %v121_v8 }
 0x162   :  { %v124_v11 = vrot.slane %v123_v10, 2 }
 0x164   :  { %v125_v12 = vadd.f32 %v124_v11, %v123_v10 }
 0x166   :  { %v126_v13 = vrot.slane %v125_v12, 1 }
 0x168   :  { %v127_v14 = vadd.f32 %v126_v13, %v125_v12 }
 0x16a   :  { %163 = vpush %v127_v14 }
 0x19b   :  { %s164_s0 = spop %163 }
 0x19c   :  { %p129_p5 = scmp.gt.f32.partialorder %s164_s0, 0.0 }
 0x19e   :  { %s131_s1 = scalar_select %p129_p5, 1, 0 }
 0x1a0   :  { %v132_v17 = vstv %s131_s1 }
 0x1a1   :  { %vm133_vm4 = vcmp.eq.s32.totalorder %v132_v17, 1 }
 0x1a2   :  { %v134_v18 = vsel %vm133_vm4, %v115_v5, %v130_v15 }
 0x1a3   :  { %v135_v19 = vadd.f32 %v134_v18, %v33_v16 }
 0x1a5   :  { %169 = vtanh.f32 %v135_v19 }
 0x1b2   :  { %v170_v20 = vpop.eup %169 }
 0x1b3   :  { %137 = vst.msk [vmem:[#allocation5] sm:$0x3] %vm118_vm3, %v170_v20 }
 0x1b4   :  { %202 = shalt.err (!%p199_p10)
}
 0x1b5   :  { %147 = dma.vmem_to_hbm [thread:$0]  %s145_s25, 32, %s265_s4, [#allocation4]  }
 0x1b6   :  { %213 = dma.done.wait [#allocation4], 32  }
 0x1b7   :  { %214 = vsyncadd [#allocation4], 4294967264 }
 0x1b8   :  { %151 = vsyncpa [#allocation3], 1 }
 0x1b9   :  { %152 = vsyncpa [#allocation4], 1 }

</bundles_post_ra>
